<compile_context>
chip_gen: v7x
topology: tpu7x:2x2x1
jax: 0.10.0
libtpu: 0.0.40
codegen_flags: <defaults>
</compile_context>

<pallas_src>
import jax
import jax.numpy as jnp
from jax.experimental import pallas as pl
from jax.experimental.pallas import tpu as pltpu


def _attn_kernel(x_ref, wv_ref, bv_ref, o_ref):
    # x_ref : (B, T, Din)  VMEM, f32
    # wv_ref: (1, 1, Din)  VMEM, f32   (W @ v, folded projection)
    # bv_ref: (1,)         SMEM, f32   (b . v, scalar bias on the score)
    # o_ref : (B, T)       VMEM, f32   (softmax over T, lane-dense)
    x = x_ref[...]                                   # (B, T, Din)
    wv = wv_ref[...]                                 # (1, 1, Din) broadcasts over (B, T)

    # Fused score: s[b, t] = sum_d x[b,t,d] * wv[d] + bv
    # VPU elementwise multiply + XLU lane reduce; keeps T on the lane axis of the
    # (B, T) result, so no (T,1)->(1,T) transpose is needed before the store.
    s = jnp.sum(x * wv, axis=-1) + bv_ref[0]         # (B, T)
    s = jnp.tanh(s)                                  # EUP

    # Softmax over T (axis=1) — one-shot, since T is fully resident.
    m = jnp.max(s, axis=1, keepdims=True)            # (B, 1)
    e = jnp.exp(s - m)                               # (B, T), EUP
    denom = jnp.sum(e, axis=1, keepdims=True)        # (B, 1)
    # Exact EUP reciprocal: one recip per row, then per-element multiplies
    # (avoids a per-element divide; exact so f32 tolerances are unchanged).
    o_ref[...] = e * pl.reciprocal(denom)


def classic_attention(x, w, b, v):
    """x: (B, T, Din); w: (Din, E); b: (E,); v: (E,)  ->  (B, T) softmax weights."""
    B, T, Din = x.shape
    # Fold the embed dimension away outside the kernel (O(Din*E) once, tiny).
    wv = jnp.dot(w, v).reshape(1, 1, Din).astype(jnp.float32)   # (1, 1, Din)
    bv = jnp.dot(b, v).reshape(1).astype(jnp.float32)           # (1,) scalar -> SMEM

    return pl.pallas_call(
        _attn_kernel,
        out_shape=jax.ShapeDtypeStruct((B, T), jnp.float32),
        in_specs=[
            pl.BlockSpec(memory_space=pltpu.MemorySpace.VMEM),   # x (whole array)
            pl.BlockSpec(memory_space=pltpu.MemorySpace.VMEM),   # wv
            pl.BlockSpec(memory_space=pltpu.MemorySpace.SMEM),   # bv scalar
        ],
        out_specs=pl.BlockSpec(memory_space=pltpu.MemorySpace.VMEM),
    )(x.astype(jnp.float32), wv, bv)


def classic_attention_ref(x, w, b, v):
    lin = jnp.einsum("btd,de->bte", x, w) + b
    s = jnp.tanh(jnp.einsum("bte,e->bt", lin, v))
    return jax.nn.softmax(s, axis=1)


if __name__ == "__main__":
    # Small shapes consistent with the module's forward.
    B, T, INPUT_DIM, EMBED_DIM = 2, 8, 32, 16

    key = jax.random.PRNGKey(0)
    kx, kw, kb, kv = jax.random.split(key, 4)

    # Linear(input_dim, embed_dim) stored pre-transposed as (Din, E), plus v (E,).
    x = jax.random.normal(kx, (B, T, INPUT_DIM), dtype=jnp.float32)
    w = jax.random.normal(kw, (INPUT_DIM, EMBED_DIM), dtype=jnp.float32) * 0.1
    b = jax.random.normal(kb, (EMBED_DIM,), dtype=jnp.float32) * 0.1
    v = jax.random.normal(kv, (EMBED_DIM,), dtype=jnp.float32)

    out = classic_attention(x, w, b, v)
    out = jax.block_until_ready(out)

    ref = classic_attention_ref(x, w, b, v)
    assert out.shape == (B, T)
    assert jnp.allclose(out, ref, atol=1e-5, rtol=1e-5), "mismatch vs reference"

    print("KERNEL_OK")
</pallas_src>

<mosaic_0001>
module attributes {stable_mosaic.version = 11 : i64} {
  func.func @_attn_kernel(%arg0: memref<2x8x32xf32, #tpu.memory_space<vmem>>, %arg1: memref<1x1x32xf32, #tpu.memory_space<vmem>>, %arg2: memref<1xf32, #tpu.memory_space<smem>>, %arg3: memref<2x8xf32, #tpu.memory_space<vmem>>) attributes {dimension_semantics = [], scalar_prefetch = 0 : i64, scratch_operands = 0 : i64, tpu.core_type = #tpu.core_type<tc>} {
    %c0 = arith.constant 0 : index
    %c0_0 = arith.constant 0 : index
    %c0_1 = arith.constant 0 : index
    %0 = vector.load %arg0[%c0, %c0_0, %c0_1] : memref<2x8x32xf32, #tpu.memory_space<vmem>>, vector<2x8x32xf32>
    %c0_2 = arith.constant 0 : index
    %c0_3 = arith.constant 0 : index
    %c0_4 = arith.constant 0 : index
    %1 = vector.load %arg1[%c0_2, %c0_3, %c0_4] : memref<1x1x32xf32, #tpu.memory_space<vmem>>, vector<1x1x32xf32>
    %2 = vector.broadcast %1 : vector<1x1x32xf32> to vector<2x8x32xf32>
    %3 = arith.mulf %0, %2 : vector<2x8x32xf32>
    %cst = arith.constant dense<0.000000e+00> : vector<2x8xf32>
    %4 = vector.multi_reduction <add>, %3, %cst [2] : vector<2x8x32xf32> to vector<2x8xf32>
    %c0_5 = arith.constant 0 : index
    %5 = memref.load %arg2[%c0_5] : memref<1xf32, #tpu.memory_space<smem>>
    %6 = vector.broadcast %5 : f32 to vector<2x8xf32>
    %7 = arith.addf %4, %6 : vector<2x8xf32>
    %8 = math.tanh %7 : vector<2x8xf32>
    %cst_6 = arith.constant dense<0xFF800000> : vector<2xf32>
    %9 = vector.multi_reduction <maximumf>, %8, %cst_6 [1] : vector<2x8xf32> to vector<2xf32>
    %10 = vector.shape_cast %9 : vector<2xf32> to vector<2x1xf32>
    %11 = vector.broadcast %10 : vector<2x1xf32> to vector<2x8xf32>
    %12 = arith.subf %8, %11 : vector<2x8xf32>
    %13 = math.exp %12 : vector<2x8xf32>
    %cst_7 = arith.constant dense<0.000000e+00> : vector<2xf32>
    %14 = vector.multi_reduction <add>, %13, %cst_7 [1] : vector<2x8xf32> to vector<2xf32>
    %15 = vector.shape_cast %14 : vector<2xf32> to vector<2x1xf32>
    %16 = tpu.reciprocal %15 : vector<2x1xf32> -> vector<2x1xf32>
    %17 = vector.broadcast %16 : vector<2x1xf32> to vector<2x8xf32>
    %18 = arith.mulf %13, %17 : vector<2x8xf32>
    %c0_8 = arith.constant 0 : index
    %c0_9 = arith.constant 0 : index
    %19 = vector.load %arg3[%c0_8, %c0_9] : memref<2x8xf32, #tpu.memory_space<vmem>>, vector<2x8xf32>
    tpu.vector_store %arg3[%c0_8, %c0_9], %18 {strides = array<i32>} : memref<2x8xf32, #tpu.memory_space<vmem>>, vector<2x8xf32>,
    return
  }
}

</mosaic_0001>

<bundles_post_ra>
// kernel: tpu_custom_call.1
= control target key start
LH: loop header
LB: loop body
LE: loop exit
PB: predicated region body
PF: predicated region fallthrough
CT: control target
= control target key end

     0   :  { %9 = vsyncpa [#allocation4], 0  ;;  %s286_s0 = inlined_call_operand.hbm [shape: f32[2,8,32], index: 0, kind: input, shape index: {}]   ;;  %s287_s1 = inlined_call_operand.vmem [shape: f32[1,1,32], index: 1, kind: input, shape index: {}]   ;;  %s288_s2 = inlined_call_operand.<no memory space> [shape: f32[1], index: 2, kind: input, shape index: {}]   ;;  %s289_s3 = inlined_call_operand.hbm [shape: f32[2,8], index: 3, kind: output, shape index: {}]  }
   0x1   :  { %10 = vsyncpa [#allocation5], 0  ;;  %s225_s12 = smov [#allocation3]   ;;  %s177_s16 = scalar_lea.hbm %s286_s0, 256 }
   0x2   :  { %s16_s13 = sshll.u32 %s225_s12, 4  ;;  %p178_p0 = scmp.ne.s32.totalorder %s286_s0, %s177_s16  ;;  %s17_s13 = int_to_ptr.vmem [resolvable:$true] %s16_s13 }
   0x3   :  { %p181_p1 = scmp.lt.u32.totalorder %s177_s16, %s286_s0 }
   0x5   :  { %p183_p2 = pnand %p181_p1, %p178_p0 }
   0x7   :  { %186 = shalt.err (!%p183_p2)
}
   0x8   :  { %s187_s21 = scalar_lea.vmem %s17_s13, 256  ;;  %p192_p4 = scmp.lt.s32.totalorder %s17_s13, %s17_s13 }
   0x9   :  { %p188_p3 = scmp.ne.s32.totalorder %s17_s13, %s187_s21  ;;  %p193_p5 = scmp.lt.s32.totalorder %s187_s21, %s187_s21 }
   0xb   :  { %p194_p6 = por %p193_p5, %p192_p4 }
   0xd   :  { %p195_p7 = pnand %p194_p6, %p188_p3 }
   0xf   :  { %198 = shalt.err (!%p195_p7)
}
  0x10   :  { %s226_s22 = smov 128   ;;  %s227_s23 = smov 8  }
  0x11   :  { %22 = dma.hbm_to_vmem [thread:$0]  %s286_s0, 256, %s17_s13, [#allocation4], %s226_s22, %s226_s22, %s227_s23  }
  0x12   :  { %221 = dma.done.wait [#allocation4], 256  }
  0x13   :  { %222 = vsyncadd [#allocation4], 4294967040  ;;  %v30_v0 = vld [vmem:[#allocation3] sm:$0xff]  ;;  %vm41_vm0 = vcmask 261120   ;;  %v31_v2 = vld [vmem:[#allocation3 + $0x8] sm:$0xff]  ;;  %v49_v7 = vstv %s288_s2  ;;  %v56_v12 = vlaneseq  ;;  %vm66_vm1 = vcmask 1041409  }
  0x14   :  { %v159_v1 = vld [vmem:[%s287_s1] ss:$0 sm:$0xff]  ;;  %vm69_vm2 = vcmask 58368   ;;  %v228_v22 = vmov 0   ;;  %s229_s0 = smov [#allocation6]  }
  0x15   :  { %v39_v3 = vmul.f32 %v159_v1, %v30_v0  ;;  %v40_v4 = vmul.f32 %v159_v1, %v31_v2  ;;  %v57_v13 = vand.u32 127, %v56_v12  ;;  %v59_v14 = vshrl.u32 %v56_v12, 7  ;;  %166 = vset.pattern.permute.xlu0 %v228_v22  ;;  %165 = vset.pattern.permute.xlu1 %v228_v22  ;;  %s150_s1 = sshll.u32 %s229_s0, 4  ;;  %s151_s1 = int_to_ptr.vmem [resolvable:$true] %s150_s1 }
  0x16   :  { %s199_s2 = scalar_lea.vmem %s151_s1, 32  ;;  %p204_p9 = scmp.lt.s32.totalorder %s151_s1, %s151_s1 }
  0x17   :  { %v42_v5 = vsel %vm41_vm0, %v39_v3, 0.0  ;;  %v45_v6 = vsel %vm41_vm0, %v40_v4, 0.0  ;;  %v60_v15 = vsub.s32 %v57_v13, %v59_v14  ;;  %v76_v23 = vsub.s32 0, %v59_v14  ;;  %p200_p8 = scmp.ne.s32.totalorder %s151_s1, %s199_s2  ;;  %p205_p10 = scmp.lt.s32.totalorder %s199_s2, %s199_s2 }
  0x18   :  { %43 = vadd.xlane.f32.xlu0 %v42_v5  ;;  %v80_v24 = vsub.s32 1, %v59_v14 }
  0x19   :  { %p206_p11 = por %p205_p10, %p204_p9 }
  0x1b   :  { %p207_p12 = pnand %p206_p11, %p200_p8 }
  0x1c   :  { %46 = vadd.xlane.f32.xlu0 %v45_v6 }
  0xa5   :  { %v44_v8 = vpop.xlane.xlu0 %43 }
  0xa6   :  { %v50_v9 = vadd.f32 %v49_v7, %v44_v8 }
  0xa8   :  { %167 = vtanh.f32 %v50_v9 }
  0xa9   :  { %v47_v10 = vpop.xlane.xlu0 %46 }
  0xaa   :  { %v51_v11 = vadd.f32 %v49_v7, %v47_v10 }
  0xac   :  { %169 = vtanh.f32 %v51_v11 }
  0xb2   :  { %v168_v16 = vpop.eup %167 }
  0xb3   :  { %v61_v18 = vrot.slane %v168_v16, %v60_v15 }
  0xb6   :  { %v170_v17 = vpop.eup %169 }
  0xb7   :  { %v65_v19 = vrot.slane %v170_v17, %v60_v15 }
  0xb9   :  { %v67_v20 = vsel %vm66_vm1, %v65_v19, %v61_v18 }
  0xba   :  { %v70_v21 = vsel %vm69_vm2, %v67_v20, -inf }
  0xbb   :  { %71 = vmax.xlane.f32.xlu1 %v70_v21 }
 0x148   :  { %v72_v25 = vpop.xlane.xlu1 %71 }
 0x149   :  { %v77_v26 = vrot.slane %v72_v25, %v76_v23  ;;  %v81_v27 = vrot.slane %v72_v25, %v80_v24 }
 0x14b   :  { %v84_v28 = vsub.f32 %v168_v16, %v77_v26  ;;  %v85_v29 = vsub.f32 %v170_v17, %v81_v27 }
 0x14d   :  { %v86_v30 = vmul.f32 1.442695, %v84_v28  ;;  %v88_v31 = vmul.f32 1.442695, %v85_v29 }
 0x14f   :  { %171 = vpow2.f32 %v86_v30 }
 0x150   :  { %173 = vpow2.f32 %v88_v31 }
 0x159   :  { %v172_v32 = vpop.eup %171 }
 0x15a   :  { %v174_v33 = vpop.eup %173  ;;  %93 = vperm.xlu1 %165, %v172_v32  }
 0x15b   :  { %96 = vperm.xlu0 %166, %v174_v33  }
 0x1d9   :  { %v94_v34 = vpop.permute.xlu1 %93 }
 0x1da   :  { %v97_v35 = vpop.permute.xlu0 %96  ;;  %v101_v36 = vrot.slane %v94_v34, %v60_v15 }
 0x1db   :  { %v105_v37 = vrot.slane %v97_v35, %v60_v15 }
 0x1dd   :  { %v106_v38 = vsel %vm66_vm1, %v105_v37, %v101_v36 }
 0x1de   :  { %v108_v39 = vsel %vm69_vm2, %v106_v38, 0.0 }
 0x1df   :  { %109 = vadd.xlane.f32.xlu1 %v108_v39 }
 0x26c   :  { %v110_v40 = vpop.xlane.xlu1 %109 }
 0x26d   :  { %175 = vrcp.f32 %v110_v40 }
 0x277   :  { %v176_v41 = vpop.eup %175 }
 0x278   :  { %v116_v42 = vrot.slane %v176_v41, %v76_v23  ;;  %v120_v44 = vrot.slane %v176_v41, %v80_v24 }
 0x27a   :  { %v123_v43 = vmul.f32 %v172_v32, %v116_v42  ;;  %v124_v45 = vmul.f32 %v174_v33, %v120_v44 }
 0x27c   :  { %128 = vperm.xlu0 %166, %v123_v43  }
 0x280   :  { %131 = vperm.xlu0 %166, %v124_v45  }
 0x2fb   :  { %v129_v46 = vpop.permute.xlu0 %128 }
 0x2fc   :  { %v136_v48 = vrot.slane %v129_v46, %v60_v15 }
 0x2ff   :  { %v132_v47 = vpop.permute.xlu0 %131 }
 0x300   :  { %v140_v49 = vrot.slane %v132_v47, %v60_v15 }
 0x302   :  { %v141_v50 = vsel %vm66_vm1, %v140_v49, %v136_v48 }
 0x303   :  { %143 = vst.msk [vmem:[#allocation6] sm:$0x3] %vm69_vm2, %v141_v50 }
 0x304   :  { %210 = shalt.err (!%p207_p12)
}
 0x305   :  { %s211_s5 = scalar_lea.hbm %s289_s3, 32 }
 0x306   :  { %p212_p13 = scmp.ne.s32.totalorder %s289_s3, %s211_s5  ;;  %p215_p0 = scmp.lt.u32.totalorder %s211_s5, %s289_s3 }
 0x308   :  { %p217_p1 = pnand %p215_p0, %p212_p13 }
 0x30a   :  { %220 = shalt.err (!%p217_p1)
}
 0x30b   :  { %153 = dma.vmem_to_hbm [thread:$0]  %s151_s1, 32, %s289_s3, [#allocation5]  }
 0x30c   :  { %223 = dma.done.wait [#allocation5], 32  }
 0x30d   :  { %224 = vsyncadd [#allocation5], 4294967264 }
 0x30e   :  { %157 = vsyncpa [#allocation4], 1 }
 0x30f   :  { %158 = vsyncpa [#allocation5], 1 }

</bundles_post_ra>
